<compile_context>
chip_gen: v7x
topology: tpu7x:2x2x1
jax: 0.10.0
libtpu: 0.0.40
codegen_flags: <defaults>
</compile_context>

<pallas_src>
import functools

import jax
import jax.numpy as jnp
import numpy as np
from jax import lax
from jax.experimental import pallas as pl
from jax.experimental.pallas import tpu as pltpu

BN_EPS = 1e-5
VMEM_LIMIT = 32 * 1024 * 1024  # safe on v5e/v6e/v7x


def _round_up(x, m):
    return (x + m - 1) // m * m


# ---------------------------------------------------------------------------
# Kernel 1: conv-as-matmul (K-blocked, bf16 operands, f32 accumulate)
#           + fused per-channel sum / sum-of-squares for BatchNorm stats.
# Grid = (row_tiles, k_blocks); both axes "arbitrary" (acc + stats accumulate).
# ---------------------------------------------------------------------------
def conv_stats_kernel(p_ref, w_ref, b_ref, y_ref, sum_ref, sq_ref, acc_ref,
                      *, tm, m_valid, m_padded):
    i = pl.program_id(0)       # row-tile index
    kb = pl.program_id(1)      # K-block index
    nkb = pl.num_programs(1)

    @pl.when(kb == 0)
    def _init_acc():
        acc_ref[...] = jnp.zeros_like(acc_ref)

    @pl.when(jnp.logical_and(i == 0, kb == 0))
    def _init_stats():
        sum_ref[...] = jnp.zeros_like(sum_ref)
        sq_ref[...] = jnp.zeros_like(sq_ref)

    # bf16 x bf16 -> f32 on the MXU, accumulated in f32 scratch.
    acc_ref[...] += jnp.dot(p_ref[...], w_ref[...],
                            preferred_element_type=jnp.float32)

    @pl.when(kb == nkb - 1)
    def _epilogue():
        y = acc_ref[...] + b_ref[...]          # (tm, Cpad) + (1, Cpad)
        y_ref[...] = y
        if m_valid < m_padded:                 # static: only emitted when rows are padded
            row = i * tm + lax.broadcasted_iota(jnp.int32, y.shape, 0)
            y = jnp.where(row < m_valid, y, 0.0)
        sum_ref[...] += jnp.sum(y, axis=0, keepdims=True)
        sq_ref[...] += jnp.sum(y * y, axis=0, keepdims=True)


# ---------------------------------------------------------------------------
# Kernel 2: batchnorm affine  o = y*scale + shift   (scale/shift precomputed)
# ---------------------------------------------------------------------------
def bn_affine_kernel(y_ref, scale_ref, shift_ref, o_ref):
    o_ref[...] = y_ref[...] * scale_ref[...] + shift_ref[...]


# ---------------------------------------------------------------------------
# Glue: im2col in plain JAX (NHWC)
# ---------------------------------------------------------------------------
def im2col_nhwc(x_nhwc, k, stride, padding, dilation):
    N, H, W, C = x_nhwc.shape
    xp = jnp.pad(x_nhwc, ((0, 0), (padding, padding), (padding, padding), (0, 0)))
    H_out = (H + 2 * padding - dilation * (k - 1) - 1) // stride + 1
    W_out = (W + 2 * padding - dilation * (k - 1) - 1) // stride + 1
    cols = []
    for kh in range(k):
        for kw in range(k):
            h0 = kh * dilation
            w0 = kw * dilation
            patch = xp[:, h0:h0 + (H_out - 1) * stride + 1:stride,
                          w0:w0 + (W_out - 1) * stride + 1:stride, :]
            cols.append(patch)
    # flatten order (kh, kw, cin) matches the weight permutation below
    patches = jnp.concatenate(cols, axis=-1)              # (N, H_out, W_out, k*k*C)
    return patches.reshape(N * H_out * W_out, k * k * C), H_out, W_out


# ---------------------------------------------------------------------------
# Wrapper: full conv2DBatchNorm forward
# ---------------------------------------------------------------------------
def conv2d_batchnorm(x_nchw, weight, bias, gamma, beta, *, stride, padding,
                     dilation=1, tm=256):
    N, C_in, H, W = x_nchw.shape
    C_out, _, kH, kW = weight.shape
    assert kH == kW, "square kernel assumed"
    k = kH

    x_nhwc = jnp.transpose(x_nchw, (0, 2, 3, 1))
    patches, H_out, W_out = im2col_nhwc(x_nhwc, k, stride, padding, dilation)
    M, K = patches.shape

    # ---- MXU-friendly padding ------------------------------------------------
    C_pad = _round_up(C_out, 128)          # lane-dense output
    K_pad = _round_up(K, 128)              # dense contraction dim
    M_pad = _round_up(M, tm)               # ragged last tile handled via stats mask

    # K-block size: largest multiple-of-128 divisor of K_pad, capped at 512.
    tk = K_pad
    for cand in (512, 384, 256, 128):
        if cand <= K_pad and K_pad % cand == 0:
            tk = cand
            break
    n_kblk = K_pad // tk
    n_tiles = M_pad // tm

    # bf16 matmul operands (stats / BN stay in f32).
    patches_p = jnp.pad(patches, ((0, M_pad - M), (0, K_pad - K))).astype(jnp.bfloat16)
    # (Cout, Cin, kh, kw) -> (kh, kw, Cin, Cout) -> (K, Cout), padded.
    w_mat = jnp.transpose(weight, (2, 3, 1, 0)).reshape(K, C_out)
    w_mat_p = jnp.pad(w_mat, ((0, K_pad - K), (0, C_pad - C_out))).astype(jnp.bfloat16)
    b_row = jnp.pad(bias.reshape(1, C_out).astype(jnp.float32),
                    ((0, 0), (0, C_pad - C_out)))
    g_row = jnp.pad(gamma.reshape(1, C_out).astype(jnp.float32),
                    ((0, 0), (0, C_pad - C_out)))
    be_row = jnp.pad(beta.reshape(1, C_out).astype(jnp.float32),
                     ((0, 0), (0, C_pad - C_out)))

    # --- pass 1: conv matmul (K-blocked) + per-channel stats -------------------
    kernel1 = functools.partial(conv_stats_kernel, tm=tm, m_valid=M, m_padded=M_pad)
    conv_out, sums, sqs = pl.pallas_call(
        kernel1,
        out_shape=(
            jax.ShapeDtypeStruct((M_pad, C_pad), jnp.float32),
            jax.ShapeDtypeStruct((1, C_pad), jnp.float32),
            jax.ShapeDtypeStruct((1, C_pad), jnp.float32),
        ),
        grid_spec=pltpu.PrefetchScalarGridSpec(
            num_scalar_prefetch=0,
            grid=(n_tiles, n_kblk),
            in_specs=[
                pl.BlockSpec((tm, tk), lambda i, kb: (i, kb)),
                pl.BlockSpec((tk, C_pad), lambda i, kb: (kb, 0)),
                pl.BlockSpec((1, C_pad), lambda i, kb: (0, 0)),
            ],
            out_specs=[
                pl.BlockSpec((tm, C_pad), lambda i, kb: (i, 0)),
                pl.BlockSpec((1, C_pad), lambda i, kb: (0, 0)),
                pl.BlockSpec((1, C_pad), lambda i, kb: (0, 0)),
            ],
            scratch_shapes=[pltpu.VMEM((tm, C_pad), jnp.float32)],
        ),
        compiler_params=pltpu.CompilerParams(
            # stats + accumulator are shared across both axes -> serial
            dimension_semantics=("arbitrary", "arbitrary"),
            vmem_limit_bytes=VMEM_LIMIT),
    )(patches_p, w_mat_p, b_row)

    # --- BN affine coefficients (tiny (1,Cpad) math in plain JAX) --------------
    inv_m = 1.0 / float(M)
    mean = sums * inv_m
    var = jnp.maximum(sqs * inv_m - mean * mean, 0.0)   # clamp: cancellation safety
    scale = g_row * lax.rsqrt(var + BN_EPS)
    shift = be_row - mean * scale

    # --- pass 2: in-place normalize with a large row tile ----------------------
    tm2 = tm
    while tm2 * 2 <= 1024 and M_pad % (tm2 * 2) == 0:
        tm2 *= 2

    out_mat = pl.pallas_call(
        bn_affine_kernel,
        out_shape=jax.ShapeDtypeStruct((M_pad, C_pad), jnp.float32),
        grid_spec=pltpu.PrefetchScalarGridSpec(
            num_scalar_prefetch=0,
            grid=(M_pad // tm2,),
            in_specs=[
                pl.BlockSpec((tm2, C_pad), lambda i: (i, 0)),
                pl.BlockSpec((1, C_pad), lambda i: (0, 0)),
                pl.BlockSpec((1, C_pad), lambda i: (0, 0)),
            ],
            out_specs=pl.BlockSpec((tm2, C_pad), lambda i: (i, 0)),
        ),
        compiler_params=pltpu.CompilerParams(
            dimension_semantics=("parallel",),
            vmem_limit_bytes=VMEM_LIMIT),
        input_output_aliases={0: 0},        # normalize conv_out in place
    )(conv_out, scale, shift)

    out_nhwc = out_mat[:M, :C_out].reshape(N, H_out, W_out, C_out)
    return jnp.transpose(out_nhwc, (0, 3, 1, 2))          # back to NCHW


# ---------------------------------------------------------------------------
# Pure-JAX f32 reference (module semantics, for correctness check)
# ---------------------------------------------------------------------------
def reference(x_nchw, weight, bias, gamma, beta, *, stride, padding, dilation=1):
    y = lax.conv_general_dilated(
        x_nchw, weight,
        window_strides=(stride, stride),
        padding=((padding, padding), (padding, padding)),
        rhs_dilation=(dilation, dilation),
        dimension_numbers=("NCHW", "OIHW", "NCHW"))
    y = y + bias.reshape(1, -1, 1, 1)
    mean = y.mean(axis=(0, 2, 3), keepdims=True)
    var = y.var(axis=(0, 2, 3), keepdims=True)             # biased, like BN training
    return gamma.reshape(1, -1, 1, 1) * (y - mean) / jnp.sqrt(var + BN_EPS) \
        + beta.reshape(1, -1, 1, 1)


if __name__ == "__main__":
    # module config: conv2DBatchNorm(in_channels=4, n_filters=8, k_size=3,
    #                                stride=1, padding=1, bias=True, is_batchnorm=True)
    N, C_in, H, W = 2, 4, 16, 16
    C_out, k, stride, padding = 8, 3, 1, 1

    key = jax.random.PRNGKey(0)
    kx, kw, kb = jax.random.split(key, 3)

    x = jax.random.normal(kx, (N, C_in, H, W), dtype=jnp.float32)
    # deterministic synthetic params (PyTorch default: kaiming-uniform conv,
    # BN gamma=1, beta=0)
    fan_in = C_in * k * k
    bound = 1.0 / np.sqrt(fan_in)
    weight = jax.random.uniform(kw, (C_out, C_in, k, k), jnp.float32, -bound, bound)
    bias = jax.random.uniform(kb, (C_out,), jnp.float32, -bound, bound)
    gamma = jnp.ones((C_out,), jnp.float32)
    beta = jnp.zeros((C_out,), jnp.float32)

    out = conv2d_batchnorm(x, weight, bias, gamma, beta,
                           stride=stride, padding=padding)
    out = jax.block_until_ready(out)

    ref = reference(x, weight, bias, gamma, beta, stride=stride, padding=padding)
    # tolerance is set for bf16 MXU operands (f32 accumulation); structural errors
    # would be O(1) on these normalized outputs and still be caught.
    np.testing.assert_allclose(np.asarray(out), np.asarray(ref),
                               rtol=3e-2, atol=3e-2)
    assert out.shape == (N, C_out, H, W)
    print("KERNEL_OK")
</pallas_src>

<mosaic_0001>
module attributes {stable_mosaic.version = 11 : i64} {
  func.func @conv_stats_kernel(%arg0: i32, %arg1: i32, %arg2: memref<256x128xbf16, #tpu.memory_space<vmem>>, %arg3: memref<128x128xbf16, #tpu.memory_space<vmem>>, %arg4: memref<1x128xf32, #tpu.memory_space<vmem>>, %arg5: memref<256x128xf32, #tpu.memory_space<vmem>>, %arg6: memref<1x128xf32, #tpu.memory_space<vmem>>, %arg7: memref<1x128xf32, #tpu.memory_space<vmem>>, %arg8: memref<256x128xf32, #tpu.memory_space<vmem>>) attributes {dimension_semantics = [#tpu.dimension_semantics<arbitrary>, #tpu.dimension_semantics<arbitrary>], iteration_bounds = array<i64: 2, 1>, scalar_prefetch = 0 : i64, scratch_operands = 1 : i64, tpu.core_type = #tpu.core_type<tc>, window_params = [{transform_indices = @transform_0, window_bounds = array<i64: 256, 128>}, {transform_indices = @transform_1, window_bounds = array<i64: 128, 128>}, {pipeline_mode = #tpu.pipeline_mode<synchronous>, transform_indices = @transform_2, window_bounds = array<i64: 1, 128>}, {transform_indices = @transform_3, window_bounds = array<i64: 256, 128>}, {pipeline_mode = #tpu.pipeline_mode<synchronous>, transform_indices = @transform_4, window_bounds = array<i64: 1, 128>}, {pipeline_mode = #tpu.pipeline_mode<synchronous>, transform_indices = @transform_5, window_bounds = array<i64: 1, 128>}]} {
    %c0_i32 = arith.constant 0 : i32
    %0 = arith.cmpi eq, %arg1, %c0_i32 : i32
    %1 = arith.extui %0 : i1 to i32
    %c0_i32_0 = arith.constant 0 : i32
    %2 = arith.cmpi ne, %1, %c0_i32_0 : i32
    scf.if %2 {
      %cst_13 = arith.constant 0.000000e+00 : f32
      %17 = vector.broadcast %cst_13 : f32 to vector<256x128xf32>
      %c0_14 = arith.constant 0 : index
      %c0_15 = arith.constant 0 : index
      %18 = vector.load %arg8[%c0_14, %c0_15] : memref<256x128xf32, #tpu.memory_space<vmem>>, vector<256x128xf32>
      tpu.vector_store %arg8[%c0_14, %c0_15], %17 {strides = array<i32>} : memref<256x128xf32, #tpu.memory_space<vmem>>, vector<256x128xf32>,
    } else {
    }
    %c0_i32_1 = arith.constant 0 : i32
    %3 = arith.cmpi eq, %arg0, %c0_i32_1 : i32
    %c0_i32_2 = arith.constant 0 : i32
    %4 = arith.cmpi eq, %arg1, %c0_i32_2 : i32
    %5 = arith.andi %3, %4 : i1
    %6 = arith.extui %5 : i1 to i32
    %c0_i32_3 = arith.constant 0 : i32
    %7 = arith.cmpi ne, %6, %c0_i32_3 : i32
    scf.if %7 {
      %cst_13 = arith.constant 0.000000e+00 : f32
      %17 = vector.broadcast %cst_13 : f32 to vector<1x128xf32>
      %c0_14 = arith.constant 0 : index
      %c0_15 = arith.constant 0 : index
      %18 = vector.load %arg6[%c0_14, %c0_15] : memref<1x128xf32, #tpu.memory_space<vmem>>, vector<1x128xf32>
      tpu.vector_store %arg6[%c0_14, %c0_15], %17 {strides = array<i32>} : memref<1x128xf32, #tpu.memory_space<vmem>>, vector<1x128xf32>,
      %cst_16 = arith.constant 0.000000e+00 : f32
      %19 = vector.broadcast %cst_16 : f32 to vector<1x128xf32>
      %c0_17 = arith.constant 0 : index
      %c0_18 = arith.constant 0 : index
      %20 = vector.load %arg7[%c0_17, %c0_18] : memref<1x128xf32, #tpu.memory_space<vmem>>, vector<1x128xf32>
      tpu.vector_store %arg7[%c0_17, %c0_18], %19 {strides = array<i32>} : memref<1x128xf32, #tpu.memory_space<vmem>>, vector<1x128xf32>,
    } else {
    }
    %c0 = arith.constant 0 : index
    %c0_4 = arith.constant 0 : index
    %8 = vector.load %arg8[%c0, %c0_4] : memref<256x128xf32, #tpu.memory_space<vmem>>, vector<256x128xf32>
    %c0_5 = arith.constant 0 : index
    %c0_6 = arith.constant 0 : index
    %9 = vector.load %arg2[%c0_5, %c0_6] : memref<256x128xbf16, #tpu.memory_space<vmem>>, vector<256x128xbf16>
    %c0_7 = arith.constant 0 : index
    %c0_8 = arith.constant 0 : index
    %10 = vector.load %arg3[%c0_7, %c0_8] : memref<128x128xbf16, #tpu.memory_space<vmem>>, vector<128x128xbf16>
    %cst = arith.constant dense<0.000000e+00> : vector<256x128xf32>
    %11 = tpu.matmul %9, %10, %cst {dimension_numbers = #tpu.dot_dimension_numbers<[1], [0], [0], [1], [0, 0, 1, 1], [], []>} : vector<256x128xbf16>, vector<128x128xbf16>, vector<256x128xf32> -> vector<256x128xf32>
    %12 = arith.addf %8, %11 : vector<256x128xf32>
    %c0_9 = arith.constant 0 : index
    %c0_10 = arith.constant 0 : index
    %13 = vector.load %arg8[%c0_9, %c0_10] : memref<256x128xf32, #tpu.memory_space<vmem>>, vector<256x128xf32>
    tpu.vector_store %arg8[%c0_9, %c0_10], %12 {strides = array<i32>} : memref<256x128xf32, #tpu.memory_space<vmem>>, vector<256x128xf32>,
    %c0_i32_11 = arith.constant 0 : i32
    %14 = arith.cmpi eq, %arg1, %c0_i32_11 : i32
    %15 = arith.extui %14 : i1 to i32
    %c0_i32_12 = arith.constant 0 : i32
    %16 = arith.cmpi ne, %15, %c0_i32_12 : i32
    scf.if %16 {
      %c0_13 = arith.constant 0 : index
      %c0_14 = arith.constant 0 : index
      %17 = vector.load %arg8[%c0_13, %c0_14] : memref<256x128xf32, #tpu.memory_space<vmem>>, vector<256x128xf32>
      %c0_15 = arith.constant 0 : index
      %c0_16 = arith.constant 0 : index
      %18 = vector.load %arg4[%c0_15, %c0_16] : memref<1x128xf32, #tpu.memory_space<vmem>>, vector<1x128xf32>
      %19 = vector.broadcast %18 : vector<1x128xf32> to vector<256x128xf32>
      %20 = arith.addf %17, %19 : vector<256x128xf32>
      %c0_17 = arith.constant 0 : index
      %c0_18 = arith.constant 0 : index
      %21 = vector.load %arg5[%c0_17, %c0_18] : memref<256x128xf32, #tpu.memory_space<vmem>>, vector<256x128xf32>
      tpu.vector_store %arg5[%c0_17, %c0_18], %20 {strides = array<i32>} : memref<256x128xf32, #tpu.memory_space<vmem>>, vector<256x128xf32>,
      %c0_19 = arith.constant 0 : index
      %c0_20 = arith.constant 0 : index
      %22 = vector.load %arg6[%c0_19, %c0_20] : memref<1x128xf32, #tpu.memory_space<vmem>>, vector<1x128xf32>
      %cst_21 = arith.constant dense<0.000000e+00> : vector<128xf32>
      %23 = vector.multi_reduction <add>, %20, %cst_21 [0] : vector<256x128xf32> to vector<128xf32>
      %24 = vector.shape_cast %23 : vector<128xf32> to vector<1x128xf32>
      %25 = arith.addf %22, %24 : vector<1x128xf32>
      %c0_22 = arith.constant 0 : index
      %c0_23 = arith.constant 0 : index
      %26 = vector.load %arg6[%c0_22, %c0_23] : memref<1x128xf32, #tpu.memory_space<vmem>>, vector<1x128xf32>
      tpu.vector_store %arg6[%c0_22, %c0_23], %25 {strides = array<i32>} : memref<1x128xf32, #tpu.memory_space<vmem>>, vector<1x128xf32>,
      %c0_24 = arith.constant 0 : index
      %c0_25 = arith.constant 0 : index
      %27 = vector.load %arg7[%c0_24, %c0_25] : memref<1x128xf32, #tpu.memory_space<vmem>>, vector<1x128xf32>
      %28 = arith.mulf %20, %20 : vector<256x128xf32>
      %cst_26 = arith.constant dense<0.000000e+00> : vector<128xf32>
      %29 = vector.multi_reduction <add>, %28, %cst_26 [0] : vector<256x128xf32> to vector<128xf32>
      %30 = vector.shape_cast %29 : vector<128xf32> to vector<1x128xf32>
      %31 = arith.addf %27, %30 : vector<1x128xf32>
      %c0_27 = arith.constant 0 : index
      %c0_28 = arith.constant 0 : index
      %32 = vector.load %arg7[%c0_27, %c0_28] : memref<1x128xf32, #tpu.memory_space<vmem>>, vector<1x128xf32>
      tpu.vector_store %arg7[%c0_27, %c0_28], %31 {strides = array<i32>} : memref<1x128xf32, #tpu.memory_space<vmem>>, vector<1x128xf32>,
    } else {
    }
    return
  }
  func.func @transform_0(%arg0: i32, %arg1: i32) -> (i32, i32) {
    %c0_i32 = arith.constant 0 : i32
    return %arg0, %arg1 : i32, i32
  }
  func.func @transform_1(%arg0: i32, %arg1: i32) -> (i32, i32) {
    %c0_i32 = arith.constant 0 : i32
    %c0_i32_0 = arith.constant 0 : i32
    return %arg1, %c0_i32 : i32, i32
  }
  func.func @transform_2(%arg0: i32, %arg1: i32) -> (i32, i32) {
    %c0_i32 = arith.constant 0 : i32
    %c0_i32_0 = arith.constant 0 : i32
    %c0_i32_1 = arith.constant 0 : i32
    return %c0_i32, %c0_i32_0 : i32, i32
  }
  func.func @transform_3(%arg0: i32, %arg1: i32) -> (i32, i32) {
    %c0_i32 = arith.constant 0 : i32
    %c0_i32_0 = arith.constant 0 : i32
    return %arg0, %c0_i32 : i32, i32
  }
  func.func @transform_4(%arg0: i32, %arg1: i32) -> (i32, i32) {
    %c0_i32 = arith.constant 0 : i32
    %c0_i32_0 = arith.constant 0 : i32
    %c0_i32_1 = arith.constant 0 : i32
    return %c0_i32, %c0_i32_0 : i32, i32
  }
  func.func @transform_5(%arg0: i32, %arg1: i32) -> (i32, i32) {
    %c0_i32 = arith.constant 0 : i32
    %c0_i32_0 = arith.constant 0 : i32
    %c0_i32_1 = arith.constant 0 : i32
    return %c0_i32, %c0_i32_0 : i32, i32
  }
}

</mosaic_0001>

<bundles_post_ra>
// kernel: tpu_custom_call.1
= control target key start
LH: loop header
LB: loop body
LE: loop exit
PB: predicated region body
PF: predicated region fallthrough
CT: control target
= control target key end

     0   :  { %11 = vsyncpa [#allocation4], 0  ;;  %s2106_s0 = inlined_call_operand.hbm [shape: bf16[512,128], index: 0, kind: input, shape index: {}]   ;;  %s2107_s1 = inlined_call_operand.hbm [shape: bf16[128,128], index: 1, kind: input, shape index: {}]   ;;  %s2108_s2 = inlined_call_operand.vmem [shape: f32[1,128], index: 2, kind: input, shape index: {}]   ;;  %s2109_s3 = inlined_call_operand.hbm [shape: f32[512,128], index: 3, kind: output, shape index: {0}]   ;;  %s2110_s4 = inlined_call_operand.hbm [shape: f32[1,128], index: 4, kind: output, shape index: {1}]   ;;  %s2111_s5 = inlined_call_operand.hbm [shape: f32[1,128], index: 5, kind: output, shape index: {2}]  }
   0x1   :  { %13 = vsyncpa [#allocation4 + $0x1], 0 }
   0x2   :  { %14 = vsyncpa [#allocation7], 0 }
   0x3   :  { %15 = vsyncpa [#allocation5], 0 }
   0x4   :  { %17 = vsyncpa [#allocation5 + $0x1], 0 }
   0x5   :  { %18 = vsyncpa [#allocation10], 0  ;;  %s1641_s18 = smov 0   ;;  %s1643_s19 = smov 0  }
   0x6   :  { %s1645_s20 = smov 0   ;;  %s1647_s21 = smov 0  }
   0x7   :  { %s1649_s22 = smov 0   ;;  %s1651_s23 = smov 0  }
   0x8 LB: > { %s1143_s24 = sadd.s32 4294967295, %s1598_s23   ;;  %s1144_s25 = sadd.s32 4294967294, %s1598_s23   ;;  %s1598_s23 = sphi %s1651_s23, %s24_s23   ;;  %s1594_s22 = sphi %s1649_s22, %s2141_s22   ;;  %s1590_s21 = sphi %s1647_s21, %s2140_s21   ;;  %s1586_s20 = sphi %s1645_s20, %s2139_s20   ;;  %s1582_s19 = sphi %s1643_s19, %s2138_s19   ;;  %s1578_s18 = sphi %s1641_s18, %s2137_s18  }
   0x9   : > { %p58_p0 = scmp.ne.s32.totalorder %s1582_s19, %s1578_s18  ;;  %p1675_p1 = scmp.eq.s32.totalorder %s1143_s24, 0 }
   0xa   : > { %p1679_p2 = scmp.eq.s32.totalorder %s1143_s24, 1  ;;  %p135_p3 = scmp.eq.s32.totalorder %s1144_s25, 1 }
   0xb   : > { %s2119_s26 = scalar_select %p1675_p1, 1, 0 }
   0xc   : > { %s2120_s27 = scalar_select %p1679_p2, 1, 0 }
   0xd   : > { %p1685_p4 = por %p1675_p1, %p58_p0  ;;  %p1145_p5 = scmp.ge.s32.totalorder %s1598_s23, 1 }
   0xe   : > { %p1690_p6 = por %p135_p3, %p58_p0  ;;  %p184_p7 = scmp.lt.s32.totalorder %s1598_s23, 3 }
   0xf   : > { %s2121_s28 = scalar_select %p1685_p4, 1, 0 }
  0x10   : > { %s2122_s29 = scalar_select %p1690_p6, 1, 0 }
  0x11   : > { %p1695_p8 = pnand %p1145_p5, %p184_p7  ;;  %s1600_s6 = smov [#allocation6]  }
  0x12   : > { %s199_s7 = sshll.u32 %s1600_s6, 4  ;;  %s36_s9 = sadd.s32 1, %s1594_s22  ;;  %s200_s7 = int_to_ptr.vmem [resolvable:$true] %s199_s7 }
  0x13   : > { %s2123_s30 = scalar_select %p1695_p8, 1, 0 }
  0x14   : > { %p1297_p9 = pneg %p1695_p8  ;;  %s1398_s12 = scalar_lea.hbm %s2107_s1, 1024 }
  0x15   : > { %p1399_p12 = scmp.ne.s32.totalorder %s2107_s1, %s1398_s12  ;;  %p1405_p5 = scmp.lt.u32.totalorder %s1398_s12, %s2107_s1 }
  0x16   : > { %p1704_p11 = pnand %p1297_p9, %p1675_p1 }
  0x18   : > { %p1400_p13 = pneg %p1704_p11 }
  0x1a   : > { %p1401_p0 = pnand %p1400_p13, %p1399_p12 }
  0x1c   : > { %p1402_p3 = pneg %p1401_p0 }
  0x1e   : > { %p1407_p7 = pnand %p1405_p5, %p1402_p3 }
  0x20   : > { %1410 = shalt.err (!%p1407_p7)
}
  0x21   : > { %s1411_s17 = scalar_lea.vmem %s200_s7, 1024  ;;  %p1419_p1 = scmp.lt.s32.totalorder %s200_s7, %s200_s7 }
  0x22   : > { %p1412_p9 = scmp.ne.s32.totalorder %s200_s7, %s1411_s17  ;;  %p1420_p4 = scmp.lt.s32.totalorder %s1411_s17, %s1411_s17 }
  0x24   : > { %p1414_p10 = pnand %p1412_p9, %p1400_p13  ;;  %p1421_p8 = por %p1420_p4, %p1419_p1 }
  0x26   : > { %p1415_p6 = pneg %p1414_p10 }
  0x28   : > { %p1422_p2 = pnand %p1421_p8, %p1415_p6 }
  0x2a   : > { %1425 = shalt.err (!%p1422_p2)
}
  0x2b   : > { %s2117_s24 = smov 64   ;;  %s2118_s25 = smov 4  }
  0x2c   : > { %1300 = dma.hbm_to_vmem [thread:$0]  (!%p1704_p11), %s2107_s1, 1024, %s200_s7, [#allocation7], %s2117_s24, %s2117_s24, %s2118_s25  }
  0x2d   : > { %p38_p1 = scmp.ge.s32.totalorder %s36_s9, 2  ;;  %s45_s11 = sadd.s32 1, %s1586_s20 }
  0x2e   : > { %p52_p2 = scmp.ne.s32.totalorder %s1586_s20, %s1582_s19  ;;  %p53_p4 = scmp.eq.s32.totalorder %s1598_s23, 0 }
  0x2f   : > { %s2143_s9 = smov (%p38_p1, %s36_s9), 0  ;;  %p2126_p8 = scmp.ne.s32.totalorder %s2120_s27, 0 }
  0x30   : > { %p1734_p6 = por %p53_p4, %p52_p2  ;;  %s40_s13 = ssub.s32 %s1594_s22, %s2143_s9 }
  0x31   : > { %p1740_p10 = por %p2126_p8, %p52_p2  ;;  %p1310_p12 = scmp.lt.s32.totalorder %s1598_s23, 2 }
  0x32   : > { %p43_p11 = scmp.eq.s32.totalorder %s40_s13, 0  ;;  %s216_s7 = sand.u32 1, %s1586_s20  }
  0x33   : > { %s1148_s14 = sshll.u32 %s216_s7, 7  ;;  %s1190_s16 = sshll.u32 %s1594_s22, 11 }
  0x34   : > { %s1749_s15 = scalar_select %p43_p11, %s1586_s20, %s45_s11  }
  0x35   : > { %s1755_s10 = scalar_lea.hbm %s2106_s0, %s1190_s16  ;;  %s220_s24 = scalar_lea.vmem [#allocation3], %s1148_s14 }
  0x36   : > { %s228_s25 = sshll.u32 %s220_s24, 4  ;;  %p1761_p13 = pnand %p1310_p12, %p1734_p6  ;;  %s1757_s25 = int_to_ptr.vmem [resolvable:$true] %s228_s25 }
  0x37   : > { %s1765_s11 = scalar_lea.sflag [#allocation4], %s216_s7  ;;  %s1426_s17 = scalar_lea.hbm %s1755_s10, 2048 }
  0x38   : > { %p1427_p0 = scmp.ne.s32.totalorder %s1755_s10, %s1426_s17  ;;  %p1428_p3 = pneg %p1761_p13 }
  0x39   : > { %s1431_s12 = scalar_lea.hbm %s2106_s0, 4096  ;;  %p1432_p9 = scmp.lt.u32.totalorder %s1755_s10, %s2106_s0 }
  0x3a   : > { %p1429_p5 = pnand %p1428_p3, %p1427_p0  ;;  %p1433_p1 = scmp.lt.u32.totalorder %s1431_s12, %s1426_s17 }
  0x3b   : > { %p1435_p4 = scmp.lt.u32.totalorder %s1426_s17, %s1755_s10 }
  0x3c   : > { %p1430_p7 = pneg %p1429_p5  ;;  %p1434_p2 = por %p1433_p1, %p1432_p9 }
  0x3e   : > { %p1436_p6 = por %p1435_p4, %p1434_p2 }
  0x40   : > { %p1437_p8 = pnand %p1436_p6, %p1430_p7 }
  0x42   : > { %1440 = shalt.err (!%p1437_p8)
}
  0x43   : > { %s1441_s7 = scalar_lea.vmem %s1757_s25, 2048  ;;  %s1603_s24 = smov [#allocation3]  }
  0x44   : > { %p1442_p12 = scmp.ne.s32.totalorder %s1757_s25, %s1441_s7  ;;  %s1446_s14 = sshll.u32 %s1603_s24, 4  ;;  %s1447_s14 = int_to_ptr.vmem [resolvable:$false] %s1446_s14 }
  0x45   : > { %s1448_s16 = scalar_lea.vmem %s1447_s14, 4096  ;;  %p1449_p5 = scmp.lt.s32.totalorder %s1757_s25, %s1447_s14 }
  0x46   : > { %p1444_p11 = pnand %p1442_p12, %p1428_p3  ;;  %p1450_p9 = scmp.lt.s32.totalorder %s1448_s16, %s1441_s7 }
  0x48   : > { %p1445_p0 = pneg %p1444_p11  ;;  %p1451_p1 = por %p1450_p9, %p1449_p5 }
  0x4a   : > { %p1452_p2 = pnand %p1451_p1, %p1445_p0 }
  0x4c   : > { %1455 = shalt.err (!%p1452_p2)
}
  0x4d   : > { %s2129_s17 = smov 4   ;;  %s2130_s12 = smov 64  }
  0x4e   : > { %1304 = dma.hbm_to_vmem [thread:$0]  (!%p1761_p13), %s1755_s10, 2048, %s1757_s25, %s1765_s11, %s2130_s12, %s2130_s12, %s2129_s17  }
  0x4f   : > { %p2131_p3 = scmp.ne.s32.totalorder %s2123_s30, 0 }
  0x50   : > { %s1799_s6 = sand.u32 (!%p2131_p3), 1, %s1582_s19   ;;  %p2132_p7 = scmp.ne.s32.totalorder (!%p2131_p3), %s2121_s28, 0 }
  0x51   : > { %240 = sbr.rel (%p2131_p3) target bundleno = 488 (0x1e8), region = 32  ;;  %s1152_s7 = sshll.u32 (!%p2131_p3), %s1799_s6, 7 }
  0x52   : > { %s243_s24 = scalar_lea.sflag (!%p2131_p3), [#allocation4], %s1799_s6  ;;  %s1803_s14 = scalar_lea.vmem (!%p2131_p3), [#allocation3], %s1152_s7 }
  0x58   : > { %1561 = dma.done.wait (%p2132_p7), %s243_s24, 2048  }
  0x59   : > { %1563 = vsyncadd (%p2132_p7), %s243_s24, 4294965248  ;;  %p2133_p13 = scmp.ne.s32.totalorder %s2119_s26, 0 }
  0x5b   : > { %1565 = dma.done.wait (%p2133_p13), [#allocation7], 1024  }
  0x5c   : > { %1567 = vsyncadd (%p2133_p13), [#allocation7], 4294966272  ;;  %s1154_s30 = sshll.u32 %s1799_s6, 8  ;;  %p317_p4 = scmp.eq.s32.totalorder %s1590_s21, 0  ;;  %v1604_v0 = vmov 0.0  }
  0x5d   : > { %285 = vst [vmem:[#allocation2] sm:$0xff] %v1604_v0  ;;  %286 = vst [vmem:[#allocation2 + $0x8] sm:$0xff] %v1604_v0  ;;  %s1817_s26 = scalar_lea.vmem [#allocation8], %s1154_s30  ;;  %v1605_v1 = vmov (%p317_p4), 0.0  }
  0x5e   : > { %287 = vst [vmem:[#allocation2 + $0x10] sm:$0xff] %v1604_v0  ;;  %288 = vst [vmem:[#allocation2 + $0x18] sm:$0xff] %v1604_v0 }
  0x5f   : > { %289 = vst [vmem:[#allocation2 + $0x20] sm:$0xff] %v1604_v0  ;;  %290 = vst [vmem:[#allocation2 + $0x28] sm:$0xff] %v1604_v0 }
  0x60   : > { %291 = vst [vmem:[#allocation2 + $0x30] sm:$0xff] %v1604_v0  ;;  %292 = vst [vmem:[#allocation2 + $0x38] sm:$0xff] %v1604_v0 }
  0x61   : > { %293 = vst [vmem:[#allocation2 + $0x40] sm:$0xff] %v1604_v0  ;;  %294 = vst [vmem:[#allocation2 + $0x48] sm:$0xff] %v1604_v0 }
  0x62   : > { %295 = vst [vmem:[#allocation2 + $0x50] sm:$0xff] %v1604_v0  ;;  %296 = vst [vmem:[#allocation2 + $0x58] sm:$0xff] %v1604_v0 }
  0x63   : > { %297 = vst [vmem:[#allocation2 + $0x60] sm:$0xff] %v1604_v0  ;;  %298 = vst [vmem:[#allocation2 + $0x68] sm:$0xff] %v1604_v0 }
  0x64   : > { %299 = vst [vmem:[#allocation2 + $0x70] sm:$0xff] %v1604_v0  ;;  %300 = vst [vmem:[#allocation2 + $0x78] sm:$0xff] %v1604_v0 }
  0x65   : > { %301 = vst [vmem:[#allocation2 + $0x80] sm:$0xff] %v1604_v0  ;;  %302 = vst [vmem:[#allocation2 + $0x88] sm:$0xff] %v1604_v0 }
  0x66   : > { %303 = vst [vmem:[#allocation2 + $0x90] sm:$0xff] %v1604_v0  ;;  %304 = vst [vmem:[#allocation2 + $0x98] sm:$0xff] %v1604_v0  ;;  %321 = sbr.rel (!%p317_p4) target bundleno = 110 (0x6e), region = 48 }
  0x67   : > { %305 = vst [vmem:[#allocation2 + $0xa0] sm:$0xff] %v1604_v0  ;;  %306 = vst [vmem:[#allocation2 + $0xa8] sm:$0xff] %v1604_v0 }
  0x68   : > { %307 = vst [vmem:[#allocation2 + $0xb0] sm:$0xff] %v1604_v0  ;;  %308 = vst [vmem:[#allocation2 + $0xb8] sm:$0xff] %v1604_v0 }
  0x69   : > { %309 = vst [vmem:[#allocation2 + $0xc0] sm:$0xff] %v1604_v0  ;;  %310 = vst [vmem:[#allocation2 + $0xc8] sm:$0xff] %v1604_v0 }
  0x6a   : > { %311 = vst [vmem:[#allocation2 + $0xd0] sm:$0xff] %v1604_v0  ;;  %312 = vst [vmem:[#allocation2 + $0xd8] sm:$0xff] %v1604_v0 }
  0x6b   : > { %313 = vst [vmem:[#allocation2 + $0xe0] sm:$0xff] %v1604_v0  ;;  %314 = vst [vmem:[#allocation2 + $0xe8] sm:$0xff] %v1604_v0 }
  0x6c   : > { %315 = vst [vmem:[#allocation2 + $0xf0] sm:$0xff] %v1604_v0  ;;  %316 = vst [vmem:[#allocation2 + $0xf8] sm:$0xff] %v1604_v0 }
  0x6d   : > { %322 = vst [vmem:[#allocation9] sm:$0x1] %v1605_v1  ;;  %323 = vst [vmem:[#allocation11] sm:$0x1] %v1605_v1 }
  0x6e PF: > { %v1374_v2 = vld [vmem:[#allocation6] sm:$0xff]   ;;  %v1375_v3 = vld [vmem:[#allocation6 + $0x8] sm:$0xff]   ;;  %v1376_v4 = vld [vmem:[#allocation6 + $0x10] sm:$0xff]   ;;  %s1192_s10 = sshll.u32 %s1590_s21, 12  ;;  %s1005_s13 = sshll.u32 %s1817_s26, 4  ;;  %s1947_s13 = int_to_ptr.vmem [resolvable:$true] %s1005_s13 }
  0x6f   : > { %1217 = vmatprep.subr.bf16.mxu0 %v1374_v2  ;;  %1265 = vmatprep.subr.bf16.mxu1 %v1374_v2  ;;  %v1377_v5 = vld [vmem:[#allocation6 + $0x18] sm:$0xff]   ;;  %v1382_v6 = vld [vmem:[%s1803_s14] sm:$0xff]   ;;  %v1379_v8 = vld [vmem:[#allocation6 + $0x28] sm:$0xff]   ;;  %s1945_s16 = scalar_lea.hbm %s2109_s3, %s1192_s10  ;;  %s992_s17 = scalar_lea.sflag [#allocation5], %s1799_s6 }
  0x70   : > { %1218 = vmatpush3.bf16.msra.mxu0 %v1374_v2  ;;  %1273 = vmatpush3.bf16.msra.mxu1 %v1374_v2  ;;  %v1378_v7 = vld [vmem:[#allocation6 + $0x20] sm:$0xff]   ;;  %v1380_v10 = vld [vmem:[#allocation6 + $0x30] sm:$0xff]   ;;  %v1381_v11 = vld [vmem:[#allocation6 + $0x38] sm:$0xff]   ;;  %s1456_s12 = scalar_lea.vmem %s1947_s13, 4096  ;;  %s1606_s7 = smov [#allocation8]  }
  0x71   : > { %1219 = vmatprep.subr.bf16.mxu0 %v1375_v3  ;;  %1266 = vmatprep.subr.bf16.mxu1 %v1375_v3  ;;  %v1390_v9 = vld [vmem:[%s1803_s14 + $0x40] sm:$0xff]   ;;  %v1383_v12 = vld [vmem:[%s1803_s14 + $0x8] sm:$0xff]   ;;  %v1384_v14 = vld [vmem:[%s1803_s14 + $0x10] sm:$0xff]   ;;  %p1457_p6 = scmp.ne.s32.totalorder %s1947_s13, %s1456_s12  ;;  %s1460_s24 = sshll.u32 %s1606_s7, 4  ;;  %s1461_s24 = int_to_ptr.vmem [resolvable:$false] %s1460_s24 }
  0x72   : > { %1233 = vmatprep.mubr.bf16.mxu0 %v1382_v6  ;;  %1249 = vmatprep.mubr.bf16.mxu1 %v1390_v9  ;;  %v1391_v13 = vld [vmem:[%s1803_s14 + $0x48] sm:$0xff]   ;;  %v1392_v15 = vld [vmem:[%s1803_s14 + $0x50] sm:$0xff]   ;;  %v1385_v16 = vld [vmem:[%s1803_s14 + $0x18] sm:$0xff]   ;;  %p1463_p11 = scmp.lt.s32.totalorder %s1947_s13, %s1461_s24 }
  0x73   : > { %v1393_v17 = vld [vmem:[%s1803_s14 + $0x58] sm:$0xff]   ;;  %v1386_v18 = vld [vmem:[%s1803_s14 + $0x20] sm:$0xff]   ;;  %v1387_v20 = vld [vmem:[%s1803_s14 + $0x28] sm:$0xff]   ;;  %p1458_p8 = pnand %p1457_p6, %p1740_p10 }
  0x74   : > { %1220 = vmatpush3.bf16.msra.mxu0 %v1375_v3  ;;  %1274 = vmatpush3.bf16.msra.mxu1 %v1375_v3  ;;  %v1394_v19 = vld [vmem:[%s1803_s14 + $0x60] sm:$0xff]   ;;  %v1395_v21 = vld [vmem:[%s1803_s14 + $0x68] sm:$0xff]   ;;  %v1388_v22 = vld [vmem:[%s1803_s14 + $0x30] sm:$0xff]  }
  0x75   : > { %1221 = vmatprep.subr.bf16.mxu0 %v1376_v4  ;;  %1267 = vmatprep.subr.bf16.mxu1 %v1376_v4  ;;  %v1396_v23 = vld [vmem:[%s1803_s14 + $0x70] sm:$0xff]   ;;  %v1389_v24 = vld [vmem:[%s1803_s14 + $0x38] sm:$0xff]   ;;  %v324_v28 = vld [vmem:[#allocation2] sm:$0xff]  ;;  %p1459_p12 = pneg %p1458_p8 }
  0x76   : > { %v1397_v25 = vld [vmem:[%s1803_s14 + $0x78] sm:$0xff]   ;;  %v326_v26 = vld [vmem:[#allocation2 + $0x10] sm:$0xff]  ;;  %v340_v29 = vld [vmem:[#allocation2 + $0x80] sm:$0xff]  ;;  %s1462_s14 = scalar_lea.vmem %s1461_s24, 8192 }
  0x77   : > { %v342_v27 = vld [vmem:[#allocation2 + $0x90] sm:$0xff]  ;;  %v1840_v31 = vld [vmem:[%s2108_s2] ss:$0 sm:$0xff]  ;;  %v327_v32 = vld [vmem:[#allocation2 + $0x18] sm:$0xff]  ;;  %p1464_p0 = scmp.lt.s32.totalorder %s1462_s14, %s1456_s12 }
  0x78   : > { %1222 = vmatpush3.bf16.msra.mxu0 %v1376_v4  ;;  %1275 = vmatpush3.bf16.msra.mxu1 %v1376_v4  ;;  %v343_v34 = vld [vmem:[#allocation2 + $0x98] sm:$0xff]  ;;  %v325_v37 = vld [vmem:[#allocation2 + $0x8] sm:$0xff]  ;;  %v330_v58 = vld [vmem:[#allocation2 + $0x30] sm:$0xff] }
  0x79   : > { %1223 = vmatprep.subr.bf16.mxu0 %v1377_v5  ;;  %1268 = vmatprep.subr.bf16.mxu1 %v1377_v5  ;;  %v341_v40 = vld [vmem:[#allocation2 + $0x88] sm:$0xff]  ;;  %v346_v60 = vld [vmem:[#allocation2 + $0xb0] sm:$0xff]  ;;  %v328_v61 = vld [vmem:[#allocation2 + $0x20] sm:$0xff]  ;;  %p1465_p5 = por %p1464_p0, %p1463_p11 }
  0x7a   : > { %v344_v62 = vld [vmem:[#allocation2 + $0xa0] sm:$0xff]  ;;  %v331_v3 = vld [vmem:[#allocation2 + $0x38] sm:$0xff] }
  0x7b   : > { %p1466_p9 = pnand %p1465_p5, %p1459_p12 }
  0x7c   : > { %1224 = vmatpush3.bf16.msra.mxu0 %v1377_v5  ;;  %1276 = vmatpush3.bf16.msra.mxu1 %v1377_v5  ;;  %v347_v5 = vld [vmem:[#allocation2 + $0xb8] sm:$0xff] }
  0x7d   : > { %1225 = vmatprep.subr.bf16.mxu0 %v1378_v7  ;;  %1269 = vmatprep.subr.bf16.mxu1 %v1378_v7 }
  0x80   : > { %1226 = vmatpush3.bf16.msra.mxu0 %v1378_v7  ;;  %1277 = vmatpush3.bf16.msra.mxu1 %v1378_v7 }
  0x81   : > { %1227 = vmatprep.subr.bf16.mxu0 %v1379_v8  ;;  %1270 = vmatprep.subr.bf16.mxu1 %v1379_v8 }
  0x84   : > { %1228 = vmatpush3.bf16.msra.mxu0 %v1379_v8  ;;  %1278 = vmatpush3.bf16.msra.mxu1 %v1379_v8 }
  0x85   : > { %1229 = vmatprep.subr.bf16.mxu0 %v1380_v10  ;;  %1271 = vmatprep.subr.bf16.mxu1 %v1380_v10 }
  0x88   : > { %1230 = vmatpush3.bf16.msra.mxu0 %v1380_v10  ;;  %1279 = vmatpush3.bf16.msra.mxu1 %v1380_v10  ;;  %v329_v10 = vld [vmem:[#allocation2 + $0x28] sm:$0xff] }
  0x89   : > { %1231 = vmatprep.subr.bf16.mxu0 %v1381_v11  ;;  %1272 = vmatprep.subr.bf16.mxu1 %v1381_v11 }
  0x8c   : > { %1232 = vmatpush3.bf16.msra.mxu0 %v1381_v11  ;;  %1280 = vmatpush3.bf16.msra.mxu1 %v1381_v11 }
  0x8f   : > { %1234 = vmatmul.mubr.bf16.vlgmr.msra.gmra.mrb[0].mxu0 %v1383_v12  ;;  %1250 = vmatmul.mubr.bf16.vlgmr.msra.gmra.mrb[0].mxu1 %v1391_v13 }
  0x90   : > { %1237 = vmatprep.mubr.bf16.mxu0 %v1384_v14  ;;  %1253 = vmatprep.mubr.bf16.mxu1 %v1392_v15 }
  0x97   : > { %1238 = vmatmul.mubr.bf16.gmra.mrb[4].mxu0 %v1385_v16  ;;  %1254 = vmatmul.mubr.bf16.gmra.mrb[4].mxu1 %v1393_v17 }
  0x98   : > { %1241 = vmatprep.mubr.bf16.mxu0 %v1386_v18  ;;  %1257 = vmatprep.mubr.bf16.mxu1 %v1394_v19  ;;  %v345_v19 = vld [vmem:[#allocation2 + $0xa8] sm:$0xff] }
  0x9f   : > { %1242 = vmatmul.mubr.bf16.gmra.mrb[8].mxu0 %v1387_v20  ;;  %1258 = vmatmul.mubr.bf16.gmra.mrb[8].mxu1 %v1395_v21 }
  0xa0   : > { %1245 = vmatprep.mubr.bf16.mxu0 %v1388_v22  ;;  %1261 = vmatprep.mubr.bf16.mxu1 %v1396_v23 }
  0xa7   : > { %1246 = vmatmul.mubr.bf16.gmra.mrb[12].mxu0 %v1389_v24  ;;  %1262 = vmatmul.mubr.bf16.gmra.mrb[12].mxu1 %v1397_v25 }
 0x162   : > { %v1235_v30 = vpop.f32.mrb[0].mxu0  ;;  %v1251_v33 = vpop.f32.mrb[0].mxu1 }
 0x163   : > { %v711_v35 = vadd.f32 %v1235_v30, %v326_v26  ;;  %v582_v36 = vpop.f32.mrb[1].mxu0  ;;  %v727_v38 = vadd.f32 %v1251_v33, %v342_v27  ;;  %v646_v39 = vpop.f32.mrb[1].mxu1 }
 0x164   : > { %v709_v41 = vadd.f32 %v582_v36, %v324_v28  ;;  %v1236_v42 = vpop.f32.mrb[2].mxu0  ;;  %v725_v43 = vadd.f32 %v646_v39, %v340_v29  ;;  %v1252_v44 = vpop.f32.mrb[2].mxu1  ;;  %v350_v39 = vld [vmem:[#allocation2 + $0xd0] sm:$0xff] }
 0x165   : > { %743 = vst [vmem:[#allocation2 + $0x10] sm:$0xff] %v711_v35  ;;  %v817_v45 = vadd.f32 %v1840_v31, %v711_v35  ;;  %v712_v46 = vadd.f32 %v1236_v42, %v327_v32  ;;  %v585_v47 = vpop.f32.mrb[3].mxu0  ;;  %759 = vst [vmem:[#allocation2 + $0x90] sm:$0xff] %v727_v38  ;;  %v1844_v48 = vadd.f32 %v1840_v31, %v727_v38  ;;  %v649_v50 = vpop.f32.mrb[3].mxu1  ;;  %v334_v38 = vld [vmem:[#allocation2 + $0x50] sm:$0xff] }
 0x166   : > { %v728_v49 = vadd.f32 %v1252_v44, %v343_v34  ;;  %741 = vst [vmem:[#allocation2] sm:$0xff] %v709_v41  ;;  %v815_v51 = vadd.f32 %v1840_v31, %v709_v41  ;;  %v710_v52 = vadd.f32 %v585_v47, %v325_v37  ;;  %757 = vst [vmem:[#allocation2 + $0x80] sm:$0xff] %v725_v43  ;;  %v348_v41 = vld [vmem:[#allocation2 + $0xc0] sm:$0xff] }
 0x167   : > { %v1848_v53 = vadd.f32 %v1840_v31, %v725_v43  ;;  %v726_v54 = vadd.f32 %v649_v50, %v341_v40  ;;  %849 = vst [vmem:[%s1817_s26 + $0x10] sm:$0xff] %v817_v45  ;;  %744 = vst [vmem:[#allocation2 + $0x18] sm:$0xff] %v712_v46  ;;  %v818_v55 = vadd.f32 %v1840_v31, %v712_v46  ;;  %v332_v40 = vld [vmem:[#allocation2 + $0x40] sm:$0xff] }
 0x168   : > { %865 = vst [vmem:[%s1817_s26 + $0x90] sm:$0xff] %v1844_v48  ;;  %760 = vst [vmem:[#allocation2 + $0x98] sm:$0xff] %v728_v49  ;;  %v1855_v56 = vadd.f32 %v1840_v31, %v728_v49  ;;  %v816_v57 = vadd.f32 %v1840_v31, %v710_v52  ;;  %v920_v63 = vmul.f32 %v815_v51, %v815_v51  ;;  %v335_v49 = vld [vmem:[#allocation2 + $0x58] sm:$0xff] }
 0x169   : > { %847 = vst [vmem:[%s1817_s26] sm:$0xff] %v815_v51  ;;  %742 = vst [vmem:[#allocation2 + $0x8] sm:$0xff] %v710_v52  ;;  %v1862_v59 = vadd.f32 %v1840_v31, %v726_v54  ;;  %v922_v6 = vmul.f32 %v817_v45, %v817_v45  ;;  %v923_v7 = vmul.f32 %v818_v55, %v818_v55 }
 0x16a   : > { %863 = vst [vmem:[%s1817_s26 + $0x80] sm:$0xff] %v1848_v53  ;;  %758 = vst [vmem:[#allocation2 + $0x88] sm:$0xff] %v726_v54  ;;  %v880_v0 = vadd.f32 %v816_v57, %v815_v51  ;;  %v921_v1 = vmul.f32 %v816_v57, %v816_v57  ;;  %v1239_v2 = vpop.f32.mrb[4].mxu0  ;;  %v1255_v4 = vpop.f32.mrb[4].mxu1  ;;  %v351_v51 = vld [vmem:[#allocation2 + $0xd8] sm:$0xff] }
 0x16b   : > { %850 = vst [vmem:[%s1817_s26 + $0x18] sm:$0xff] %v818_v55  ;;  %866 = vst [vmem:[%s1817_s26 + $0x98] sm:$0xff] %v1855_v56  ;;  %v715_v8 = vadd.f32 %v1239_v2, %v330_v58  ;;  %v598_v9 = vpop.f32.mrb[5].mxu0  ;;  %v731_v11 = vadd.f32 %v1255_v4, %v346_v60  ;;  %v662_v12 = vpop.f32.mrb[5].mxu1  ;;  %v333_v58 = vld [vmem:[#allocation2 + $0x48] sm:$0xff] }
 0x16c   : > { %848 = vst [vmem:[%s1817_s26 + $0x8] sm:$0xff] %v816_v57  ;;  %864 = vst [vmem:[%s1817_s26 + $0x88] sm:$0xff] %v1862_v59  ;;  %v881_v13 = vadd.f32 %v880_v0, %v817_v45  ;;  %v952_v14 = vadd.f32 %v921_v1, %v920_v63  ;;  %v713_v15 = vadd.f32 %v598_v9, %v328_v61  ;;  %v1240_v16 = vpop.f32.mrb[6].mxu0  ;;  %v1256_v18 = vpop.f32.mrb[6].mxu1  ;;  %v349_v4 = vld [vmem:[#allocation2 + $0xc8] sm:$0xff] }
 0x16d   : > { %v729_v17 = vadd.f32 %v662_v12, %v344_v62  ;;  %747 = vst [vmem:[#allocation2 + $0x30] sm:$0xff] %v715_v8  ;;  %v821_v20 = vadd.f32 %v1840_v31, %v715_v8  ;;  %v716_v21 = vadd.f32 %v1240_v16, %v331_v3  ;;  %v601_v22 = vpop.f32.mrb[7].mxu0  ;;  %763 = vst [vmem:[#allocation2 + $0xb0] sm:$0xff] %v731_v11  ;;  %v665_v24 = vpop.f32.mrb[7].mxu1 }
 0x16e   : > { %v732_v23 = vadd.f32 %v1256_v18, %v347_v5  ;;  %v1872_v25 = vadd.f32 %v1840_v31, %v731_v11  ;;  %v953_v26 = vadd.f32 %v952_v14, %v922_v6  ;;  %745 = vst [vmem:[#allocation2 + $0x20] sm:$0xff] %v713_v15  ;;  %v819_v27 = vadd.f32 %v1840_v31, %v713_v15 }
 0x16f   : > { %v882_v28 = vadd.f32 %v881_v13, %v818_v55  ;;  %v714_v29 = vadd.f32 %v601_v22, %v329_v10  ;;  %761 = vst [vmem:[#allocation2 + $0xa0] sm:$0xff] %v729_v17  ;;  %853 = vst [vmem:[%s1817_s26 + $0x30] sm:$0xff] %v821_v20  ;;  %v822_v30 = vadd.f32 %v1840_v31, %v716_v21  ;;  %v338_v22 = vld [vmem:[#allocation2 + $0x70] sm:$0xff] }
 0x170   : > { %748 = vst [vmem:[#allocation2 + $0x38] sm:$0xff] %v716_v21  ;;  %v1878_v32 = vadd.f32 %v1840_v31, %v729_v17  ;;  %764 = vst [vmem:[#allocation2 + $0xb8] sm:$0xff] %v732_v23  ;;  %v730_v33 = vadd.f32 %v665_v24, %v345_v19  ;;  %v924_v35 = vmul.f32 %v819_v27, %v819_v27  ;;  %v336_v24 = vld [vmem:[#allocation2 + $0x60] sm:$0xff] }
 0x171   : > { %869 = vst [vmem:[%s1817_s26 + $0xb0] sm:$0xff] %v1872_v25  ;;  %851 = vst [vmem:[%s1817_s26 + $0x20] sm:$0xff] %v819_v27  ;;  %v883_v34 = vadd.f32 %v882_v28, %v819_v27  ;;  %v954_v36 = vadd.f32 %v953_v26, %v923_v7  ;;  %v820_v37 = vadd.f32 %v1840_v31, %v714_v29  ;;  %v352_v26 = vld [vmem:[#allocation2 + $0xe0] sm:$0xff] }
 0x172   : > { %746 = vst [vmem:[#allocation2 + $0x28] sm:$0xff] %v714_v29  ;;  %854 = vst [vmem:[%s1817_s26 + $0x38] sm:$0xff] %v822_v30  ;;  %v1888_v42 = vadd.f32 %v1840_v31, %v730_v33  ;;  %v1891_v43 = vadd.f32 %v1840_v31, %v732_v23  ;;  %v1243_v47 = vpop.f32.mrb[8].mxu0  ;;  %v1259_v50 = vpop.f32.mrb[8].mxu1  ;;  %v926_v52 = vmul.f32 %v821_v20, %v821_v20  ;;  %v354_v23 = vld [vmem:[#allocation2 + $0xf0] sm:$0xff] }
 0x173   : > { %867 = vst [vmem:[%s1817_s26 + $0xa0] sm:$0xff] %v1878_v32  ;;  %762 = vst [vmem:[#allocation2 + $0xa8] sm:$0xff] %v730_v33  ;;  %v955_v44 = vadd.f32 %v954_v36, %v924_v35  ;;  %v884_v45 = vadd.f32 %v883_v34, %v820_v37  ;;  %v925_v46 = vmul.f32 %v820_v37, %v820_v37  ;;  %v614_v57 = vpop.f32.mrb[9].mxu0  ;;  %v678_v61 = vpop.f32.mrb[9].mxu1  ;;  %v339_v35 = vld [vmem:[#allocation2 + $0x78] sm:$0xff] }
 0x174   : > { %852 = vst [vmem:[%s1817_s26 + $0x28] sm:$0xff] %v820_v37  ;;  %v927_v54 = vmul.f32 %v822_v30, %v822_v30  ;;  %v719_v55 = vadd.f32 %v1243_v47, %v334_v38  ;;  %v735_v60 = vadd.f32 %v1259_v50, %v350_v39  ;;  %868 = vst [vmem:[%s1817_s26 + $0xa8] sm:$0xff] %v1888_v42  ;;  %v1244_v1 = vpop.f32.mrb[10].mxu0  ;;  %v1260_v3 = vpop.f32.mrb[10].mxu1  ;;  %v355_v37 = vld [vmem:[#allocation2 + $0xf8] sm:$0xff] }
 0x175   : > { %870 = vst [vmem:[%s1817_s26 + $0xb8] sm:$0xff] %v1891_v43  ;;  %v885_v62 = vadd.f32 %v884_v45, %v821_v20  ;;  %v956_v63 = vadd.f32 %v955_v44, %v925_v46  ;;  %v717_v0 = vadd.f32 %v614_v57, %v332_v40  ;;  %v733_v2 = vadd.f32 %v678_v61, %v348_v41  ;;  %v617_v7 = vpop.f32.mrb[11].mxu0  ;;  %v681_v9 = vpop.f32.mrb[11].mxu1  ;;  %v337_v44 = vld [vmem:[#allocation2 + $0x68] sm:$0xff] }
 0x176   : > { %751 = vst [vmem:[#allocation2 + $0x50] sm:$0xff] %v719_v55  ;;  %v825_v5 = vadd.f32 %v1840_v31, %v719_v55  ;;  %v720_v6 = vadd.f32 %v1244_v1, %v335_v49  ;;  %767 = vst [vmem:[#allocation2 + $0xd0] sm:$0xff] %v735_v60  ;;  %v736_v8 = vadd.f32 %v1260_v3, %v351_v51  ;;  %v353_v55 = vld [vmem:[#allocation2 + $0xe8] sm:$0xff] }
 0x177   : > { %v1900_v10 = vadd.f32 %v1840_v31, %v735_v60  ;;  %v957_v11 = vadd.f32 %v956_v63, %v926_v52  ;;  %749 = vst [vmem:[#allocation2 + $0x40] sm:$0xff] %v717_v0  ;;  %v823_v12 = vadd.f32 %v1840_v31, %v717_v0  ;;  %v886_v13 = vadd.f32 %v885_v62, %v822_v30 }
 0x178   : > { %v718_v14 = vadd.f32 %v617_v7, %v333_v58  ;;  %765 = vst [vmem:[#allocation2 + $0xc0] sm:$0xff] %v733_v2  ;;  %857 = vst [vmem:[%s1817_s26 + $0x50] sm:$0xff] %v825_v5  ;;  %v826_v15 = vadd.f32 %v1840_v31, %v720_v6  ;;  %v734_v16 = vadd.f32 %v681_v9, %v349_v4 }
 0x179   : > { %752 = vst [vmem:[#allocation2 + $0x58] sm:$0xff] %v720_v6  ;;  %768 = vst [vmem:[#allocation2 + $0xd8] sm:$0xff] %v736_v8  ;;  %v1906_v17 = vadd.f32 %v1840_v31, %v733_v2  ;;  %v887_v18 = vadd.f32 %v886_v13, %v823_v12  ;;  %v928_v19 = vmul.f32 %v823_v12, %v823_v12 }
 0x17a   : > { %873 = vst [vmem:[%s1817_s26 + $0xd0] sm:$0xff] %v1900_v10  ;;  %855 = vst [vmem:[%s1817_s26 + $0x40] sm:$0xff] %v823_v12  ;;  %v958_v20 = vadd.f32 %v957_v11, %v927_v54  ;;  %v824_v21 = vadd.f32 %v1840_v31, %v718_v14  ;;  %v1914_v27 = vadd.f32 %v1840_v31, %v734_v16  ;;  %v1247_v34 = vpop.f32.mrb[12].mxu0  ;;  %v1263_v36 = vpop.f32.mrb[12].mxu1 }
 0x17b   : > { %750 = vst [vmem:[#allocation2 + $0x48] sm:$0xff] %v718_v14  ;;  %858 = vst [vmem:[%s1817_s26 + $0x58] sm:$0xff] %v826_v15  ;;  %v1917_v28 = vadd.f32 %v1840_v31, %v736_v8  ;;  %v930_v38 = vmul.f32 %v825_v5, %v825_v5  ;;  %v931_v39 = vmul.f32 %v826_v15, %v826_v15  ;;  %v630_v41 = vpop.f32.mrb[13].mxu0  ;;  %v694_v46 = vpop.f32.mrb[13].mxu1 }
 0x17c   : > { %766 = vst [vmem:[#allocation2 + $0xc8] sm:$0xff] %v734_v16  ;;  %871 = vst [vmem:[%s1817_s26 + $0xc0] sm:$0xff] %v1906_v17  ;;  %v959_v29 = vadd.f32 %v958_v20, %v928_v19  ;;  %v888_v30 = vadd.f32 %v887_v18, %v824_v21  ;;  %v929_v33 = vmul.f32 %v824_v21, %v824_v21  ;;  %v1248_v51 = vpop.f32.mrb[14].mxu0  ;;  %v1264_v54 = vpop.f32.mrb[14].mxu1 }
 0x17d   : > { %856 = vst [vmem:[%s1817_s26 + $0x48] sm:$0xff] %v824_v21  ;;  %v723_v40 = vadd.f32 %v1247_v34, %v338_v22  ;;  %v739_v45 = vadd.f32 %v1263_v36, %v354_v23  ;;  %872 = vst [vmem:[%s1817_s26 + $0xc8] sm:$0xff] %v1914_v27  ;;  %v721_v50 = vadd.f32 %v630_v41, %v336_v24  ;;  %v633_v60 = vpop.f32.mrb[15].mxu0  ;;  %v697_v62 = vpop.f32.mrb[15].mxu1 }
 0x17e   : > { %874 = vst [vmem:[%s1817_s26 + $0xd8] sm:$0xff] %v1917_v28  ;;  %v889_v47 = vadd.f32 %v888_v30, %v825_v5  ;;  %v960_v49 = vadd.f32 %v959_v29, %v929_v33  ;;  %v737_v52 = vadd.f32 %v694_v46, %v352_v26  ;;  %v724_v58 = vadd.f32 %v1248_v51, %v339_v35 }
 0x17f   : > { %755 = vst [vmem:[#allocation2 + $0x70] sm:$0xff] %v723_v40  ;;  %v829_v57 = vadd.f32 %v1840_v31, %v723_v40  ;;  %771 = vst [vmem:[#allocation2 + $0xf0] sm:$0xff] %v739_v45  ;;  %v740_v61 = vadd.f32 %v1264_v54, %v355_v37  ;;  %v1928_v63 = vadd.f32 %v1840_v31, %v739_v45 }
 0x180   : > { %v961_v0 = vadd.f32 %v960_v49, %v930_v38  ;;  %753 = vst [vmem:[#allocation2 + $0x60] sm:$0xff] %v721_v50  ;;  %v827_v1 = vadd.f32 %v1840_v31, %v721_v50  ;;  %v890_v2 = vadd.f32 %v889_v47, %v826_v15  ;;  %v722_v3 = vadd.f32 %v633_v60, %v337_v44 }
 0x181   : > { %769 = vst [vmem:[#allocation2 + $0xe0] sm:$0xff] %v737_v52  ;;  %861 = vst [vmem:[%s1817_s26 + $0x70] sm:$0xff] %v829_v57  ;;  %v830_v4 = vadd.f32 %v1840_v31, %v724_v58  ;;  %v738_v5 = vadd.f32 %v697_v62, %v353_v55  ;;  %v1936_v6 = vadd.f32 %v1840_v31, %v737_v52 }
 0x182   : > { %756 = vst [vmem:[#allocation2 + $0x78] sm:$0xff] %v724_v58  ;;  %772 = vst [vmem:[#allocation2 + $0xf8] sm:$0xff] %v740_v61  ;;  %v891_v7 = vadd.f32 %v890_v2, %v827_v1  ;;  %v932_v8 = vmul.f32 %v827_v1, %v827_v1  ;;  %v962_v9 = vadd.f32 %v961_v0, %v931_v39 }
 0x183   : > { %877 = vst [vmem:[%s1817_s26 + $0xf0] sm:$0xff] %v1928_v63  ;;  %859 = vst [vmem:[%s1817_s26 + $0x60] sm:$0xff] %v827_v1  ;;  %v828_v11 = vadd.f32 %v1840_v31, %v722_v3  ;;  %v1951_v12 = vadd.f32 %v1840_v31, %v738_v5  ;;  %v1954_v13 = vadd.f32 %v1840_v31, %v740_v61 }
 0x184   : > { %754 = vst [vmem:[#allocation2 + $0x68] sm:$0xff] %v722_v3  ;;  %862 = vst [vmem:[%s1817_s26 + $0x78] sm:$0xff] %v830_v4  ;;  %v963_v14 = vadd.f32 %v962_v9, %v932_v8  ;;  %v934_v18 = vmul.f32 %v829_v57, %v829_v57 }
 0x185   : > { %770 = vst [vmem:[#allocation2 + $0xe8] sm:$0xff] %v738_v5  ;;  %875 = vst [vmem:[%s1817_s26 + $0xe0] sm:$0xff] %v1936_v6  ;;  %v892_v15 = vadd.f32 %v891_v7, %v828_v11  ;;  %v933_v16 = vmul.f32 %v828_v11, %v828_v11 }
 0x186   : > { %860 = vst [vmem:[%s1817_s26 + $0x68] sm:$0xff] %v828_v11  ;;  %876 = vst [vmem:[%s1817_s26 + $0xe8] sm:$0xff] %v1951_v12 }
 0x187   : > { %878 = vst [vmem:[%s1817_s26 + $0xf8] sm:$0xff] %v1954_v13  ;;  %v893_v19 = vadd.f32 %v892_v15, %v829_v57  ;;  %v964_v20 = vadd.f32 %v963_v14, %v933_v16 }
 0x188   : > { %1469 = shalt.err (!%p1466_p9)
}
 0x189   : > { %s1470_s30 = scalar_lea.hbm %s1945_s16, 4096  ;;  %s1474_s25 = scalar_lea.hbm %s2109_s3, 8192 }
 0x18a   : > { %p1471_p1 = scmp.ne.s32.totalorder %s1945_s16, %s1470_s30  ;;  %p1475_p7 = scmp.lt.u32.totalorder %s1945_s16, %s2109_s3 }
 0x18b   : > { %p1476_p13 = scmp.lt.u32.totalorder %s1474_s25, %s1470_s30  ;;  %p1478_p6 = scmp.lt.u32.totalorder %s1470_s30, %s1945_s16 }
 0x18c   : > { %p1472_p2 = pnand %p1471_p1, %p1740_p10 }
 0x18d   : > { %p1477_p4 = por %p1476_p13, %p1475_p7 }
 0x18e   : > { %p1473_p3 = pneg %p1472_p2 }
 0x18f   : > { %p1479_p8 = por %p1478_p6, %p1477_p4 }
 0x191   : > { %p1480_p12 = pnand %p1479_p8, %p1473_p3 }
 0x193   : > { %1483 = shalt.err (!%p1480_p12)
}
 0x194   : > { %s1607_s11 = smov 128   ;;  %s1608_s12 = smov 8   ;;  %v935_v31 = vmul.f32 %v830_v4, %v830_v4  ;;  %v965_v21 = vadd.f32 %v964_v20, %v934_v18  ;;  %v894_v22 = vadd.f32 %v893_v19, %v830_v4  ;;  %v936_v23 = vmul.f32 %v1848_v53, %v1848_v53  ;;  %v879_v20 = vld [vmem:[#allocation9] sm:$0x1] }
 0x195   : > { %1287 = dma.vmem_to_hbm [thread:$0]  (%p1740_p10), %s1947_s13, 4096, %s1945_s16, %s992_s17, %s1607_s11, %s1607_s11, %s1608_s12   ;;  %v937_v29 = vmul.f32 %v1862_v59, %v1862_v59  ;;  %v938_v35 = vmul.f32 %v1844_v48, %v1844_v48  ;;  %v939_v38 = vmul.f32 %v1855_v56, %v1855_v56  ;;  %v941_v44 = vmul.f32 %v1888_v42, %v1888_v42 }
 0x196   : > { %v895_v24 = vadd.f32 %v894_v22, %v1848_v53  ;;  %v966_v26 = vadd.f32 %v965_v21, %v935_v31  ;;  %v940_v53 = vmul.f32 %v1878_v32, %v1878_v32  ;;  %v942_v46 = vmul.f32 %v1872_v25, %v1872_v25  ;;  %s1609_s8 = smov [#allocation9]   ;;  %v919_v21 = vld [vmem:[#allocation11] sm:$0x1]  ;;  %s1610_s13 = smov [#allocation11]  }
 0x197   : > { %v943_v49 = vmul.f32 %v1891_v43, %v1891_v43  ;;  %v945_v54 = vmul.f32 %v1914_v27, %v1914_v27  ;;  %v946_v57 = vmul.f32 %v1900_v10, %v1900_v10  ;;  %v947_v60 = vmul.f32 %v1917_v28, %v1917_v28  ;;  %s1019_s6 = sshll.u32 %s1609_s8, 4  ;;  %s1030_s16 = sshll.u32 %s1610_s13, 4  ;;  %s1020_s6 = int_to_ptr.vmem [resolvable:$true] %s1019_s6  ;;  %s2035_s16 = int_to_ptr.vmem [resolvable:$true] %s1030_s16 }
 0x198   : > { %v896_v30 = vadd.f32 %v895_v24, %v1862_v59  ;;  %v967_v33 = vadd.f32 %v966_v26, %v936_v23  ;;  %v949_v1 = vmul.f32 %v1951_v12, %v1951_v12  ;;  %v950_v3 = vmul.f32 %v1928_v63, %v1928_v63  ;;  %s1484_s17 = scalar_lea.vmem %s1020_s6, 16  ;;  %p2134_p11 = scmp.ne.s32.totalorder %s2120_s27, 0 }
 0x199   : > { %v951_v5 = vmul.f32 %v1954_v13, %v1954_v13  ;;  %p1485_p10 = scmp.ne.s32.totalorder %s1020_s6, %s1484_s17  ;;  %s1490_s7 = scalar_lea.vmem %s1020_s6, 32 }
 0x19a   : > { %v897_v34 = vadd.f32 %v896_v30, %v1844_v48  ;;  %v968_v36 = vadd.f32 %v967_v33, %v937_v29  ;;  %p1491_p9 = scmp.lt.s32.totalorder %s1020_s6, %s1020_s6  ;;  %p1492_p1 = scmp.lt.s32.totalorder %s1490_s7, %s1484_s17 }
 0x19b   : > { %p1486_p0 = pnand %p1485_p10, %p2134_p11 }
 0x19c   : > { %v898_v37 = vadd.f32 %v897_v34, %v1855_v56  ;;  %v969_v39 = vadd.f32 %v968_v36, %v938_v35  ;;  %p1493_p2 = por %p1492_p1, %p1491_p9 }
 0x19d   : > { %p1487_p5 = pneg %p1486_p0 }
 0x19e   : > { %v899_v40 = vadd.f32 %v898_v37, %v1878_v32  ;;  %v970_v41 = vadd.f32 %v969_v39, %v939_v38  ;;  %v944_v32 = vmul.f32 %v1906_v17, %v1906_v17 }
 0x19f   : > { %p1494_p3 = pnand %p1493_p2, %p1487_p5 }
 0x1a0   : > { %v900_v59 = vadd.f32 %v899_v40, %v1888_v42  ;;  %v971_v45 = vadd.f32 %v970_v41, %v940_v53 }
 0x1a2   : > { %v901_v48 = vadd.f32 %v900_v59, %v1872_v25  ;;  %v972_v47 = vadd.f32 %v971_v45, %v941_v44 }
 0x1a4   : > { %v902_v56 = vadd.f32 %v901_v48, %v1891_v43  ;;  %v973_v50 = vadd.f32 %v972_v47, %v942_v46 }
 0x1a6   : > { %v903_v51 = vadd.f32 %v902_v56, %v1906_v17  ;;  %v974_v52 = vadd.f32 %v973_v50, %v943_v49  ;;  %v948_v17 = vmul.f32 %v1936_v6, %v1936_v6 }
 0x1a8   : > { %v904_v42 = vadd.f32 %v903_v51, %v1914_v27  ;;  %v975_v55 = vadd.f32 %v974_v52, %v944_v32 }
 0x1aa   : > { %v905_v25 = vadd.f32 %v904_v42, %v1900_v10  ;;  %v976_v58 = vadd.f32 %v975_v55, %v945_v54 }
 0x1ac   : > { %v906_v43 = vadd.f32 %v905_v25, %v1917_v28  ;;  %v977_v61 = vadd.f32 %v976_v58, %v946_v57 }
 0x1ae   : > { %v907_v62 = vadd.f32 %v906_v43, %v1936_v6  ;;  %v978_v0 = vadd.f32 %v977_v61, %v947_v60 }
 0x1b0   : > { %v908_v27 = vadd.f32 %v907_v62, %v1951_v12  ;;  %v979_v2 = vadd.f32 %v978_v0, %v948_v17 }
 0x1b2   : > { %v909_v10 = vadd.f32 %v908_v27, %v1928_v63  ;;  %v980_v4 = vadd.f32 %v979_v2, %v949_v1 }
 0x1b4   : > { %v910_v28 = vadd.f32 %v909_v10, %v1954_v13  ;;  %v981_v7 = vadd.f32 %v980_v4, %v950_v3 }
 0x1b6   : > { %v911_v6 = vrot.slane %v910_v28, 4  ;;  %v982_v8 = vadd.f32 %v981_v7, %v951_v5 }
 0x1b8   : > { %v912_v9 = vadd.f32 %v911_v6, %v910_v28  ;;  %v983_v11 = vrot.slane %v982_v8, 4 }
 0x1ba   : > { %v913_v14 = vrot.slane %v912_v9, 2  ;;  %v984_v15 = vadd.f32 %v983_v11, %v982_v8 }
 0x1bc   : > { %v914_v12 = vadd.f32 %v913_v14, %v912_v9  ;;  %v985_v16 = vrot.slane %v984_v15, 2 }
 0x1be   : > { %v915_v18 = vrot.slane %v914_v12, 1  ;;  %v986_v19 = vadd.f32 %v985_v16, %v984_v15 }
 0x1c0   : > { %v916_v63 = vadd.f32 %v915_v18, %v914_v12  ;;  %v987_v31 = vrot.slane %v986_v19, 1 }
 0x1c2   : > { %v917_v13 = vadd.f32 %v916_v63, %v879_v20  ;;  %v988_v22 = vadd.f32 %v987_v31, %v986_v19 }
 0x1c4   : > { %918 = vst [vmem:[#allocation9] sm:$0x1] %v917_v13  ;;  %v989_v23 = vadd.f32 %v988_v22, %v919_v21 }
 0x1c5   : > { %1497 = shalt.err (!%p1494_p3)
}
 0x1c6   : > { %s1498_s30 = scalar_lea.hbm %s2110_s4, 16 }
 0x1c7   : > { %p1499_p7 = scmp.ne.s32.totalorder %s2110_s4, %s1498_s30  ;;  %p1504_p6 = scmp.lt.u32.totalorder %s1498_s30, %s2110_s4 }
 0x1c9   : > { %p1500_p13 = pnand %p1499_p7, %p2134_p11 }
 0x1cb   : > { %p1501_p4 = pneg %p1500_p13 }
 0x1cd   : > { %p1506_p8 = pnand %p1504_p6, %p1501_p4 }
 0x1cf   : > { %1509 = shalt.err (!%p1506_p8)
}
 0x1d0   : > { %1289 = dma.vmem_to_hbm [thread:$0]  (%p2134_p11), %s1020_s6, 16, %s2110_s4, [#allocation10]   ;;  %990 = vst [vmem:[#allocation11] sm:$0x1] %v989_v23 }
 0x1d1   : > { %s1510_s12 = scalar_lea.vmem %s2035_s16, 16  ;;  %s1516_s8 = scalar_lea.vmem %s2035_s16, 32 }
 0x1d2   : > { %p1511_p12 = scmp.ne.s32.totalorder %s2035_s16, %s1510_s12  ;;  %p1517_p5 = scmp.lt.s32.totalorder %s2035_s16, %s2035_s16 }
 0x1d3   : > { %p1518_p9 = scmp.lt.s32.totalorder %s1516_s8, %s1510_s12 }
 0x1d4   : > { %p1512_p10 = pnand %p1511_p12, %p2134_p11 }
 0x1d5   : > { %p1519_p1 = por %p1518_p9, %p1517_p5 }
 0x1d6   : > { %p1513_p0 = pneg %p1512_p10 }
 0x1d8   : > { %p1520_p2 = pnand %p1519_p1, %p1513_p0 }
 0x1da   : > { %1523 = shalt.err (!%p1520_p2)
}
 0x1db   : > { %s1524_s7 = scalar_lea.hbm %s2111_s5, 16 }
 0x1dc   : > { %p1525_p3 = scmp.ne.s32.totalorder %s2111_s5, %s1524_s7  ;;  %p1530_p4 = scmp.lt.u32.totalorder %s1524_s7, %s2111_s5 }
 0x1de   : > { %p1526_p7 = pnand %p1525_p3, %p2134_p11 }
 0x1e0   : > { %p1527_p13 = pneg %p1526_p7 }
 0x1e2   : > { %p1532_p6 = pnand %p1530_p4, %p1527_p13 }
 0x1e4   : > { %1535 = shalt.err (!%p1532_p6)
}
 0x1e5   : > { %1291 = dma.vmem_to_hbm [thread:$0]  (%p2134_p11), %s2035_s16, 16, %s2111_s5, [#allocation10]  }
 0x1e6   : > { %1569 = dma.done.wait (%p2134_p11), [#allocation10], 32  }
 0x1e7   : > { %1571 = vsyncadd (%p2134_p11), [#allocation10], 4294967264 }
 0x1e8 PF: > { %s1050_s25 = sand.u32 1, %s1578_s18   ;;  %p2135_p8 = scmp.ne.s32.totalorder %s2122_s29, 0 }
 0x1e9   : > { %p2136_p12 = scmp.ge.s32.totalorder %s1598_s23, 2  ;;  %s1051_s10 = scalar_lea.sflag [#allocation5], %s1050_s25 }
 0x1eb   : > { %p1306_p10 = pnand %p2136_p12, %p2135_p8 }
 0x1ed   : > { %1573 = dma.done.wait (!%p1306_p10), %s1051_s10, 4096  }
 0x1ee   : > { %1575 = vsyncadd (!%p1306_p10), %s1051_s10, 4294963200  ;;  %s24_s23 = sadd.s32 1, %s1598_s23   ;;  %s2137_s18 = smov %s1582_s19 }
 0x1ef   : > { %p21_p0 = scmp.ge.s32.totalorder %s24_s23, 4   ;;  %s2138_s19 = smov %s1586_s20 }
 0x1f0   : > { %s2139_s20 = smov %s1749_s15  ;;  %s2140_s21 = smov %s1594_s22 }
 0x1f1   : > { %s2141_s22 = smov %s2143_s9  ;;  %23 = sbr.rel (!%p21_p0) target bundleno = 8 (0x8), region = 110 }
 0x1f8   :  { %1056 = vsyncpa [#allocation4], 1 }
 0x1f9   :  { %1058 = vsyncpa [#allocation4 + $0x1], 1 }
 0x1fa   :  { %1059 = vsyncpa [#allocation7], 1 }
 0x1fb   :  { %1060 = vsyncpa [#allocation5], 1 }
 0x1fc   :  { %1062 = vsyncpa [#allocation5 + $0x1], 1 }
 0x1fd   :  { %1063 = vsyncpa [#allocation10], 1 }

</bundles_post_ra>
